<compile_context>
chip_gen: v5e
topology: v5e:2x2
jax: 0.10.0
libtpu: 0.0.40
codegen_flags: <defaults>
</compile_context>

<pallas_src>
import math
from functools import partial

import jax
import jax.numpy as jnp
from jax.experimental import pallas as pl
from jax.experimental.pallas import tpu as pltpu

LANE = 128      # lane width (last dim tile)
SUBLANE = 8     # f32 sublane width (second-to-last dim tile)


def _round_up(x: int, m: int) -> int:
    return ((x + m - 1) // m) * m


def _choose_tiling(m: int, requested_tile: int):
    """Pick (tile_m, m_pad, grid_m).  Keeps >=2 grid steps when the batch allows it so the
    'parallel' batch axis can shard across both TensorCores on v7x, and minimizes padded rows."""
    m_min = _round_up(max(m, 1), SUBLANE)
    tile = _round_up(min(requested_tile, m_min), SUBLANE)
    if m_min > SUBLANE and m_min < 2 * tile:
        tile = _round_up((m_min + 1) // 2, SUBLANE)
    m_pad = _round_up(m_min, tile)
    return tile, m_pad, m_pad // tile


def _densenet_fused_kernel(x_ref, w_ref, b_ref, o_ref, xpad_ref, *,
                           n_layers: int, in_dim: int, feat_pad: int):
    """Fused MLP: ((x @ W0 + b0).relu() @ W1 + b1).relu() ... @ W_{L-1} + b_{L-1}.

    x_ref:    (tile_m, in_dim)   f32 activations at their real feature width
    w_ref:    (L, F, F)          bf16 stacked transposed weights (zero in padded rows/cols)
    b_ref:    (L, 1, F)          f32 stacked biases (zero in padded lanes)
    o_ref:    (tile_m, F)        f32 padded output (real output = first out_dim lanes)
    xpad_ref: (tile_m, F)        bf16 scratch: x zero-extended to the 128-lane width
    """
    # Zero-extend x to the padded feature width inside the kernel (HBM copy stays un-padded).
    # Re-zeroed every grid step so it is safe under parallel (megacore) sharding.
    if in_dim < feat_pad:
        xpad_ref[...] = jnp.zeros_like(xpad_ref)
    xpad_ref[:, :in_dim] = x_ref[...].astype(xpad_ref.dtype)
    h = xpad_ref[...]                                      # (tile_m, F) bf16

    for j in range(n_layers):                              # static unroll over layers
        # Per-layer ref reads: no materialization of the full weight/bias stacks.
        acc = jnp.dot(h, w_ref[j], preferred_element_type=jnp.float32)   # bf16 MXU, f32 acc
        acc = acc + b_ref[j]                               # (1, F) f32 bias, f32 epilogue
        if j != n_layers - 1:
            h = jnp.maximum(acc, 0.0).astype(h.dtype)      # ReLU in f32 -> bf16 for next push
        else:
            o_ref[...] = acc.astype(o_ref.dtype)


def pack_densenet_params(params, feat_pad: int, w_dtype=jnp.bfloat16):
    """Stack per-layer (w_t (K,N), b (1,N)) into zero-padded (L,F,F) bf16 and (L,1,F) f32."""
    n_layers = len(params)
    w_stack = jnp.zeros((n_layers, feat_pad, feat_pad), w_dtype)
    b_stack = jnp.zeros((n_layers, 1, feat_pad), jnp.float32)
    for j, (w_t, b) in enumerate(params):
        k, n = w_t.shape
        w_stack = w_stack.at[j, :k, :n].set(w_t.astype(w_dtype))
        b_stack = b_stack.at[j, 0, :n].set(b.reshape(-1).astype(jnp.float32))
    return w_stack, b_stack


def densenet_forward(x, params, *, tile_m: int = 2048, compute_dtype=jnp.bfloat16):
    """Forward pass matching DenseNet(layers, nn.ReLU): Linear->ReLU repeated, last Linear only.
    (normalize=False, out_nonlinearity=None — the module defaults.)"""
    # TODO(synk): BatchNorm1d branch (normalize=True) not implemented — default path only.
    n_layers = len(params)
    in_dim = params[0][0].shape[0]
    out_dim = params[-1][0].shape[1]
    feat = max(max(w.shape[0] for w, _ in params), max(w.shape[1] for w, _ in params))
    feat_pad = _round_up(feat, LANE)

    m = x.shape[0]
    tile_m, m_pad, grid_m = _choose_tiling(m, tile_m)

    # Only row-pad the batch axis; never blow x up to the 128-lane feature width in HBM.
    x_in = x if m_pad == m else jnp.zeros((m_pad, in_dim), x.dtype).at[:m].set(x)
    w_stack, b_stack = pack_densenet_params(params, feat_pad, compute_dtype)

    # VMEM budget from actual buffer math (double-buffered pipeline blocks + scratch + headroom
    # for the unrolled layer-chain temporaries); clamp to v7x's 64 MiB part with margin.
    vmem_est = (2 * tile_m * in_dim * x_in.dtype.itemsize          # x input blocks
                + 2 * w_stack.size * w_stack.dtype.itemsize        # weight stack
                + 2 * b_stack.size * b_stack.dtype.itemsize        # bias stack
                + 2 * tile_m * feat_pad * 4                        # f32 output blocks
                + tile_m * feat_pad * 2                            # bf16 x-pad scratch
                + 4 * tile_m * feat_pad * 4)                       # chain temporaries headroom
    vmem_limit = min(48 << 20, max(32 << 20, int(1.5 * vmem_est) + (4 << 20)))

    flops = 2 * m_pad * feat_pad * feat_pad * n_layers
    bytes_accessed = (x_in.size * x_in.dtype.itemsize
                      + w_stack.size * w_stack.dtype.itemsize
                      + b_stack.size * b_stack.dtype.itemsize
                      + m_pad * feat_pad * 4)

    out_pad = pl.pallas_call(
        partial(_densenet_fused_kernel, n_layers=n_layers, in_dim=in_dim, feat_pad=feat_pad),
        out_shape=jax.ShapeDtypeStruct((m_pad, feat_pad), x.dtype),
        grid=(grid_m,),
        in_specs=[
            pl.BlockSpec((tile_m, in_dim), lambda i: (i, 0)),
            pl.BlockSpec((n_layers, feat_pad, feat_pad), lambda i: (0, 0, 0)),
            pl.BlockSpec((n_layers, 1, feat_pad), lambda i: (0, 0, 0)),
        ],
        out_specs=pl.BlockSpec((tile_m, feat_pad), lambda i: (i, 0)),
        scratch_shapes=[pltpu.VMEM((tile_m, feat_pad), compute_dtype)],
        compiler_params=pltpu.CompilerParams(
            dimension_semantics=("parallel",),      # shard batch tiles across TCs (v7x megacore)
            vmem_limit_bytes=vmem_limit),
        cost_estimate=pl.CostEstimate(
            flops=flops, transcendentals=0, bytes_accessed=bytes_accessed),
    )(x_in, w_stack, b_stack)

    # Slice padded rows / lanes away on the host side.
    return out_pad[:m, :out_dim]


def init_densenet_params(key, layers):
    """Deterministic init matching nn.Linear default: U(-1/sqrt(fan_in), 1/sqrt(fan_in))."""
    params = []
    for j in range(len(layers) - 1):
        fan_in, fan_out = layers[j], layers[j + 1]
        key, kw, kb = jax.random.split(key, 3)
        bound = 1.0 / math.sqrt(fan_in)
        # PyTorch stores weight as (out, in); we keep it transposed as (in, out).
        w_t = jax.random.uniform(kw, (fan_in, fan_out), jnp.float32, -bound, bound)
        b = jax.random.uniform(kb, (1, fan_out), jnp.float32, -bound, bound)
        params.append((w_t, b))
    return params


def densenet_reference(x, params, compute_dtype=jnp.float32):
    """Pure-JAX reference. compute_dtype=bfloat16 mirrors the kernel's MXU quantization."""
    h = x
    n_layers = len(params)
    for j, (w_t, b) in enumerate(params):
        h = jnp.dot(h.astype(compute_dtype), w_t.astype(compute_dtype),
                    preferred_element_type=jnp.float32)
        h = h + b.reshape(1, -1).astype(jnp.float32)
        if j != n_layers - 1:
            h = jnp.maximum(h, 0.0)
    return h


if __name__ == "__main__":
    # DenseNet([32, 64, 64, 16], nn.ReLU)
    layers = [32, 64, 64, 16]
    batch = 8

    key = jax.random.PRNGKey(0)
    key, kx = jax.random.split(key)
    x = jax.random.normal(kx, (batch, layers[0]), jnp.float32)
    params = init_densenet_params(key, layers)

    out = densenet_forward(x, params)
    out = jax.block_until_ready(out)
    assert out.shape == (batch, layers[-1])

    # Tight check against a bf16-matmul / f32-accumulate reference (same quantization as kernel).
    ref_bf16 = densenet_reference(x, params, compute_dtype=jnp.bfloat16)
    err_bf16 = float(jnp.max(jnp.abs(out - ref_bf16)))
    assert jnp.allclose(out, ref_bf16, atol=2e-3, rtol=2e-3), err_bf16

    # Sanity check against the full-f32 reference (bf16 MXU inputs -> looser tolerance).
    ref_f32 = densenet_reference(x, params, compute_dtype=jnp.float32)
    err_f32 = float(jnp.max(jnp.abs(out - ref_f32)))
    assert jnp.allclose(out, ref_f32, atol=5e-2, rtol=5e-2), err_f32

    print("KERNEL_OK")
</pallas_src>

<mosaic_0001>
module attributes {stable_mosaic.version = 11 : i64} {
  func.func @_densenet_fused_kernel(%arg0: i32, %arg1: memref<8x32xf32, #tpu.memory_space<vmem>>, %arg2: memref<3x128x128xbf16, #tpu.memory_space<vmem>>, %arg3: memref<3x1x128xf32, #tpu.memory_space<vmem>>, %arg4: memref<8x128xf32, #tpu.memory_space<vmem>>, %arg5: memref<8x128xbf16, #tpu.memory_space<vmem>>) attributes {dimension_semantics = [#tpu.dimension_semantics<parallel>], iteration_bounds = array<i64: 1>, scalar_prefetch = 0 : i64, scratch_operands = 1 : i64, tpu.core_type = #tpu.core_type<tc>, window_params = [{transform_indices = @transform_0, window_bounds = array<i64: 8, 32>}, {pipeline_mode = #tpu.pipeline_mode<synchronous>, transform_indices = @transform_1, window_bounds = array<i64: 3, 128, 128>}, {pipeline_mode = #tpu.pipeline_mode<synchronous>, transform_indices = @transform_2, window_bounds = array<i64: 3, 1, 128>}, {transform_indices = @transform_3, window_bounds = array<i64: 8, 128>}]} {
    %cst = arith.constant 0.000000e+00 : bf16
    %0 = vector.broadcast %cst : bf16 to vector<8x128xbf16>
    %c0 = arith.constant 0 : index
    %c0_0 = arith.constant 0 : index
    %1 = vector.load %arg5[%c0, %c0_0] : memref<8x128xbf16, #tpu.memory_space<vmem>>, vector<8x128xbf16>
    tpu.vector_store %arg5[%c0, %c0_0], %0 {strides = array<i32>} : memref<8x128xbf16, #tpu.memory_space<vmem>>, vector<8x128xbf16>,
    %c0_1 = arith.constant 0 : index
    %c0_2 = arith.constant 0 : index
    %2 = vector.load %arg1[%c0_1, %c0_2] : memref<8x32xf32, #tpu.memory_space<vmem>>, vector<8x32xf32>
    %3 = arith.truncf %2 : vector<8x32xf32> to vector<8x32xbf16>
    %c0_3 = arith.constant 0 : index
    %c0_4 = arith.constant 0 : index
    %4 = vector.load %arg5[%c0_3, %c0_4] : memref<8x128xbf16, #tpu.memory_space<vmem>>, vector<8x32xbf16>
    tpu.vector_store %arg5[%c0_3, %c0_4], %3 {strides = array<i32>} : memref<8x128xbf16, #tpu.memory_space<vmem>>, vector<8x32xbf16>,
    %c0_5 = arith.constant 0 : index
    %c0_6 = arith.constant 0 : index
    %5 = vector.load %arg5[%c0_5, %c0_6] : memref<8x128xbf16, #tpu.memory_space<vmem>>, vector<8x128xbf16>
    %c0_7 = arith.constant 0 : index
    %c0_8 = arith.constant 0 : index
    %c0_9 = arith.constant 0 : index
    %6 = vector.load %arg2[%c0_7, %c0_8, %c0_9] : memref<3x128x128xbf16, #tpu.memory_space<vmem>>, vector<1x128x128xbf16>
    %7 = vector.shape_cast %6 : vector<1x128x128xbf16> to vector<128x128xbf16>
    %cst_10 = arith.constant dense<0.000000e+00> : vector<8x128xf32>
    %8 = tpu.matmul %5, %7, %cst_10 {dimension_numbers = #tpu.dot_dimension_numbers<[1], [0], [0], [1], [0, 0, 1, 1], [], []>} : vector<8x128xbf16>, vector<128x128xbf16>, vector<8x128xf32> -> vector<8x128xf32>
    %c0_11 = arith.constant 0 : index
    %c0_12 = arith.constant 0 : index
    %c0_13 = arith.constant 0 : index
    %9 = vector.load %arg3[%c0_11, %c0_12, %c0_13] : memref<3x1x128xf32, #tpu.memory_space<vmem>>, vector<1x1x128xf32>
    %10 = vector.shape_cast %9 : vector<1x1x128xf32> to vector<1x128xf32>
    %11 = vector.broadcast %10 : vector<1x128xf32> to vector<8x128xf32>
    %12 = arith.addf %8, %11 : vector<8x128xf32>
    %cst_14 = arith.constant 0.000000e+00 : f32
    %13 = vector.broadcast %cst_14 : f32 to vector<8x128xf32>
    %14 = arith.maximumf %12, %13 : vector<8x128xf32>
    %15 = arith.truncf %14 : vector<8x128xf32> to vector<8x128xbf16>
    %c1 = arith.constant 1 : index
    %c0_15 = arith.constant 0 : index
    %c0_16 = arith.constant 0 : index
    %16 = vector.load %arg2[%c1, %c0_15, %c0_16] : memref<3x128x128xbf16, #tpu.memory_space<vmem>>, vector<1x128x128xbf16>
    %17 = vector.shape_cast %16 : vector<1x128x128xbf16> to vector<128x128xbf16>
    %cst_17 = arith.constant dense<0.000000e+00> : vector<8x128xf32>
    %18 = tpu.matmul %15, %17, %cst_17 {dimension_numbers = #tpu.dot_dimension_numbers<[1], [0], [0], [1], [0, 0, 1, 1], [], []>} : vector<8x128xbf16>, vector<128x128xbf16>, vector<8x128xf32> -> vector<8x128xf32>
    %c1_18 = arith.constant 1 : index
    %c0_19 = arith.constant 0 : index
    %c0_20 = arith.constant 0 : index
    %19 = vector.load %arg3[%c1_18, %c0_19, %c0_20] : memref<3x1x128xf32, #tpu.memory_space<vmem>>, vector<1x1x128xf32>
    %20 = vector.shape_cast %19 : vector<1x1x128xf32> to vector<1x128xf32>
    %21 = vector.broadcast %20 : vector<1x128xf32> to vector<8x128xf32>
    %22 = arith.addf %18, %21 : vector<8x128xf32>
    %cst_21 = arith.constant 0.000000e+00 : f32
    %23 = vector.broadcast %cst_21 : f32 to vector<8x128xf32>
    %24 = arith.maximumf %22, %23 : vector<8x128xf32>
    %25 = arith.truncf %24 : vector<8x128xf32> to vector<8x128xbf16>
    %c2 = arith.constant 2 : index
    %c0_22 = arith.constant 0 : index
    %c0_23 = arith.constant 0 : index
    %26 = vector.load %arg2[%c2, %c0_22, %c0_23] : memref<3x128x128xbf16, #tpu.memory_space<vmem>>, vector<1x128x128xbf16>
    %27 = vector.shape_cast %26 : vector<1x128x128xbf16> to vector<128x128xbf16>
    %cst_24 = arith.constant dense<0.000000e+00> : vector<8x128xf32>
    %28 = tpu.matmul %25, %27, %cst_24 {dimension_numbers = #tpu.dot_dimension_numbers<[1], [0], [0], [1], [0, 0, 1, 1], [], []>} : vector<8x128xbf16>, vector<128x128xbf16>, vector<8x128xf32> -> vector<8x128xf32>
    %c2_25 = arith.constant 2 : index
    %c0_26 = arith.constant 0 : index
    %c0_27 = arith.constant 0 : index
    %29 = vector.load %arg3[%c2_25, %c0_26, %c0_27] : memref<3x1x128xf32, #tpu.memory_space<vmem>>, vector<1x1x128xf32>
    %30 = vector.shape_cast %29 : vector<1x1x128xf32> to vector<1x128xf32>
    %31 = vector.broadcast %30 : vector<1x128xf32> to vector<8x128xf32>
    %32 = arith.addf %28, %31 : vector<8x128xf32>
    %c0_28 = arith.constant 0 : index
    %c0_29 = arith.constant 0 : index
    %33 = vector.load %arg4[%c0_28, %c0_29] : memref<8x128xf32, #tpu.memory_space<vmem>>, vector<8x128xf32>
    tpu.vector_store %arg4[%c0_28, %c0_29], %32 {strides = array<i32>} : memref<8x128xf32, #tpu.memory_space<vmem>>, vector<8x128xf32>,
    return
  }
  func.func @transform_0(%arg0: i32) -> (i32, i32) {
    %c0_i32 = arith.constant 0 : i32
    %c0_i32_0 = arith.constant 0 : i32
    return %arg0, %c0_i32 : i32, i32
  }
  func.func @transform_1(%arg0: i32) -> (i32, i32, i32) {
    %c0_i32 = arith.constant 0 : i32
    %c0_i32_0 = arith.constant 0 : i32
    %c0_i32_1 = arith.constant 0 : i32
    %c0_i32_2 = arith.constant 0 : i32
    return %c0_i32, %c0_i32_0, %c0_i32_1 : i32, i32, i32
  }
  func.func @transform_2(%arg0: i32) -> (i32, i32, i32) {
    %c0_i32 = arith.constant 0 : i32
    %c0_i32_0 = arith.constant 0 : i32
    %c0_i32_1 = arith.constant 0 : i32
    %c0_i32_2 = arith.constant 0 : i32
    return %c0_i32, %c0_i32_0, %c0_i32_1 : i32, i32, i32
  }
  func.func @transform_3(%arg0: i32) -> (i32, i32) {
    %c0_i32 = arith.constant 0 : i32
    %c0_i32_0 = arith.constant 0 : i32
    return %arg0, %c0_i32 : i32, i32
  }
}

</mosaic_0001>

<bundles_post_ra>
// kernel: tpu_custom_call.1
= control target key start
LH: loop header
LB: loop body
LE: loop exit
PB: predicated region body
PF: predicated region fallthrough
CT: control target
= control target key end

     0   :  { %8 = vsyncpa [#allocation4], 0  ;;  %s612_s0 = inlined_call_operand.hbm [shape: f32[8,32], index: 0, kind: input, shape index: {}]   ;;  %s613_s1 = inlined_call_operand.hbm [shape: bf16[3,128,128], index: 1, kind: input, shape index: {}]   ;;  %s614_s2 = inlined_call_operand.hbm [shape: f32[3,1,128], index: 2, kind: input, shape index: {}]   ;;  %s615_s3 = inlined_call_operand.hbm [shape: f32[8,128], index: 3, kind: output, shape index: {}]  }
   0x1   :  { %9 = vsyncpa [#allocation7], 0  ;;  %s26_s14 = sshll.u32 %s613_s1, 4  ;;  %s27_s14 = int_to_ptr.hbm [resolvable:$true] %s26_s14 }
   0x2   :  { %10 = vsyncpa [#allocation5], 0  ;;  %s571_s15 = smov [#allocation6]   ;;  %s16_s19 = sshll.u32 %s612_s0, 4  ;;  %s17_s19 = int_to_ptr.hbm [resolvable:$true] %s16_s19 }
   0x3   :  { %s28_s16 = sshll.u32 %s571_s15, 4  ;;  %s572_s20 = smov 64   ;;  %s29_s16 = int_to_ptr.vmem [resolvable:$true] %s28_s16 }
   0x4   :  { %s573_s21 = smov 4   ;;  %s574_s22 = smov [#allocation3]  }
   0x5   :  { %34 = dma.hbm_to_vmem [thread:$0]  %s27_s14, 3072, %s29_s16, [#allocation7], %s572_s20, %s572_s20, %s573_s21  }
   0x6   :  { %s18_s23 = sshll.u32 %s574_s22, 4  ;;  %s39_s26 = sshll.u32 %s614_s2, 4  ;;  %s19_s23 = int_to_ptr.vmem [resolvable:$true] %s18_s23  ;;  %s40_s26 = int_to_ptr.hbm [resolvable:$true] %s39_s26 }
   0x7   :  { %21 = dma.hbm_to_vmem [thread:$0]  %s17_s19, 128, %s19_s23, [#allocation4]  }
   0x8   :  { %s575_s1 = smov [#allocation8]   ;;  %s576_s28 = smov 16  }
   0x9   :  { %s41_s27 = sshll.u32 %s575_s1, 4  ;;  %s577_s29 = smov 1   ;;  %s42_s27 = int_to_ptr.vmem [resolvable:$true] %s41_s27 }
   0xa   :  { %47 = dma.hbm_to_vmem [thread:$0]  %s40_s26, 48, %s42_s27, [#allocation7], %s576_s28, %s576_s28, %s577_s29  }
   0xb   :  { %565 = dma.done.wait [#allocation4], 128  }
   0xc   :  { %566 = vsyncadd [#allocation4], 4294967168 }
   0xd   :  { %567 = dma.done.wait [#allocation7], 3120  }
   0xe   :  { %568 = vsyncadd [#allocation7], 4294964176  ;;  %v578_v0 = vmov 0   ;;  %v440_v1 = vld [vmem:[#allocation6 + $0x38] sm:$0xff]  ;;  %v439_v2 = vld [vmem:[#allocation6 + $0x30] sm:$0xff]  ;;  %vm64_vm0 = vcmask 257024  }
   0xf   :  { %61 = vst [vmem:[#allocation2] sm:$0xf] %v578_v0  ;;  %135 = vmatpush.bf16.msra.mxu0 %v440_v1  ;;  %v62_v3 = vld [vmem:[#allocation3] sm:$0xff]  ;;  %v447_v6 = vld [vmem:[#allocation6 + $0x70] sm:$0xff]  ;;  %v438_v7 = vld [vmem:[#allocation6 + $0x28] sm:$0xff]  ;;  %s579_s0 = smov [#allocation9]  }
  0x10   :  { %v63_v4 = vpack.c.bf16 %v62_v3, %v62_v3  ;;  %v448_v5 = vld [vmem:[#allocation6 + $0x78] sm:$0xff]  ;;  %v446_v8 = vld [vmem:[#allocation6 + $0x68] sm:$0xff]  ;;  %v437_v9 = vld [vmem:[#allocation6 + $0x20] sm:$0xff]  ;;  %s324_s2 = sshll.u32 %s579_s0, 4  ;;  %s326_s5 = sshll.u32 %s615_s3, 4  ;;  %s325_s2 = int_to_ptr.vmem [resolvable:$true] %s324_s2  ;;  %s327_s5 = int_to_ptr.hbm [resolvable:$true] %s326_s5 }
  0x11   :  { %220 = vmatpush.bf16.msra.mxu1 %v448_v5  ;;  %v445_v10 = vld [vmem:[#allocation6 + $0x60] sm:$0xff]  ;;  %v436_v11 = vld [vmem:[#allocation6 + $0x18] sm:$0xff]  ;;  %v435_v13 = vld [vmem:[#allocation6 + $0x10] sm:$0xff] }
  0x12   :  { %65 = vst.msk [vmem:[#allocation2] sm:$0xf] %vm64_vm0, %v63_v4  ;;  %v444_v12 = vld [vmem:[#allocation6 + $0x58] sm:$0xff]  ;;  %v443_v14 = vld [vmem:[#allocation6 + $0x50] sm:$0xff]  ;;  %v434_v15 = vld [vmem:[#allocation6 + $0x8] sm:$0xff] }
  0x13   :  { %136 = vmatpush.bf16.msra.mxu0 %v439_v2  ;;  %v433_v16 = vld [vmem:[#allocation6] sm:$0xff]  ;;  %v442_v18 = vld [vmem:[#allocation6 + $0x48] sm:$0xff]  ;;  %v456_v20 = vld [vmem:[#allocation6 + $0xb8] sm:$0xff] }
  0x14   :  { %v441_v19 = vld [vmem:[#allocation6 + $0x40] sm:$0xff]  ;;  %305 = vmatpush.bf16.msra.mxu2 %v456_v20  ;;  %v455_v21 = vld [vmem:[#allocation6 + $0xb0] sm:$0xff]  ;;  %v454_v22 = vld [vmem:[#allocation6 + $0xa8] sm:$0xff] }
  0x15   :  { %221 = vmatpush.bf16.msra.mxu1 %v447_v6  ;;  %v453_v23 = vld [vmem:[#allocation6 + $0xa0] sm:$0xff]  ;;  %v452_v24 = vld [vmem:[#allocation6 + $0x98] sm:$0xff]  ;;  %v451_v25 = vld [vmem:[#allocation6 + $0x90] sm:$0xff] }
  0x16   :  { %v466_v26 = vld [vmem:[#allocation8] ss:$0 sm:$0xff]  ;;  %v450_v32 = vld [vmem:[#allocation6 + $0x88] sm:$0xff]  ;;  %v467_v34 = vld [vmem:[#allocation8 + $0x1] ss:$0 sm:$0xff] }
  0x17   :  { %137 = vmatpush.bf16.msra.mxu0 %v438_v7  ;;  %v449_v33 = vld [vmem:[#allocation6 + $0x80] sm:$0xff] }
  0x18   :  { %306 = vmatpush.bf16.msra.mxu2 %v455_v21  ;;  %v468_v40 = vld [vmem:[#allocation8 + $0x2] ss:$0 sm:$0xff] }
  0x19   :  { %222 = vmatpush.bf16.msra.mxu1 %v446_v8  ;;  %v66_v17 = vld [vmem:[#allocation2] sm:$0xf] }
  0x1b   :  { %138 = vmatpush.bf16.msra.mxu0 %v437_v9 }
  0x1c   :  { %307 = vmatpush.bf16.msra.mxu2 %v454_v22 }
  0x1d   :  { %223 = vmatpush.bf16.msra.mxu1 %v445_v10 }
  0x1f   :  { %139 = vmatpush.bf16.msra.mxu0 %v436_v11 }
  0x20   :  { %308 = vmatpush.bf16.msra.mxu2 %v453_v23 }
  0x21   :  { %224 = vmatpush.bf16.msra.mxu1 %v444_v12 }
  0x23   :  { %140 = vmatpush.bf16.msra.mxu0 %v435_v13 }
  0x24   :  { %309 = vmatpush.bf16.msra.mxu2 %v452_v24 }
  0x25   :  { %225 = vmatpush.bf16.msra.mxu1 %v443_v14 }
  0x27   :  { %141 = vmatpush.bf16.msra.mxu0 %v434_v15 }
  0x28   :  { %310 = vmatpush.bf16.msra.mxu2 %v451_v25 }
  0x29   :  { %226 = vmatpush.bf16.msra.mxu1 %v442_v18 }
  0x2b   :  { %142 = vmatpush.bf16.msra.mxu0 %v433_v16 }
  0x2c   :  { %311 = vmatpush.bf16.msra.mxu2 %v450_v32 }
  0x2d   :  { %227 = vmatpush.bf16.msra.mxu1 %v441_v19 }
  0x2e   :  { %143 = vmatmul.bf16.vlgmr.msra.gmra.mxu0 %v66_v17 }
  0x30   :  { %312 = vmatpush.bf16.msra.mxu2 %v449_v33 }
  0xab   :  { %v144_v27 = vpop.f32.mrf.mxu0 }
  0xac   :  { %v145_v28 = vadd.f32 %v466_v26, %v144_v27 }
  0xae   :  { %v148_v29 = vmax.f32 %v145_v28, 0.0 }
  0xb0   :  { %v149_v30 = vpack.c.bf16 %v148_v29, %v148_v29 }
  0xb2   :  { %228 = vmatmul.bf16.vlgmr.msra.gmra.mxu1 %v149_v30 }
  0xb3   :  { %v146_v31 = vpop.f32.mrf.mxu0 }
 0x12f   :  { %v229_v35 = vpop.f32.mrf.mxu1 }
 0x130   :  { %v230_v36 = vadd.f32 %v467_v34, %v229_v35 }
 0x132   :  { %v233_v37 = vmax.f32 %v230_v36, 0.0 }
 0x134   :  { %v234_v38 = vpack.c.bf16 %v233_v37, %v233_v37 }
 0x136   :  { %313 = vmatmul.bf16.vlgmr.msra.gmra.mxu2 %v234_v38 }
 0x137   :  { %v231_v39 = vpop.f32.mrf.mxu1 }
 0x1b9   :  { %v314_v41 = vpop.f32.mrf.mxu2 }
 0x1ba   :  { %v315_v42 = vadd.f32 %v468_v40, %v314_v41 }
 0x1bc   :  { %318 = vst [vmem:[#allocation9] sm:$0xff] %v315_v42 }
 0x1bd   :  { %329 = dma.vmem_to_hbm [thread:$0]  %s325_s2, 128, %s327_s5, [#allocation5]  }
 0x1c1   :  { %v316_v43 = vpop.f32.mrf.mxu2 }
 0x1c2   :  { %569 = dma.done.wait [#allocation5], 128  }
 0x1c3   :  { %570 = vsyncadd [#allocation5], 4294967168 }
 0x1c4   :  { %334 = vsyncpa [#allocation4], 1 }
 0x1c5   :  { %335 = vsyncpa [#allocation7], 1 }
 0x1c6   :  { %336 = vsyncpa [#allocation5], 1 }

</bundles_post_ra>
